<compile_context>
chip_gen: v7x
topology: tpu7x:2x2x1
jax: 0.10.0
libtpu: 0.0.40
codegen_flags: <defaults>
</compile_context>

<pallas_src>
import jax
import jax.numpy as jnp
from jax.experimental import pallas as pl
from jax.experimental.pallas import tpu as pltpu


def _lambda_func(x):
    # The `func` captured by Lambda: SiLU (x * sigmoid(x)).
    return x * jax.nn.sigmoid(x)


def _lambda_kernel(x_ref, o_ref):
    # Elementwise func evaluated on the whole VMEM tile, in f32.
    x = x_ref[...].astype(jnp.float32)
    o_ref[...] = _lambda_func(x).astype(o_ref.dtype)


def lambda_forward(x: jax.Array, *, target_block_bytes: int = 2 * 1024 * 1024) -> jax.Array:
    """Apply Lambda(func) to x (NCHW or any shape) via a Pallas TPU kernel."""
    orig_shape = x.shape
    orig_dtype = x.dtype
    n = x.size
    itemsize = jnp.dtype(orig_dtype).itemsize

    # Sublane alignment for the block's second-minor dim (f32:8, bf16:16, i8:32).
    row_align = {4: 8, 2: 16, 1: 32}.get(itemsize, 8)

    # Widest lane dim (multiple of 128) that divides n exactly -> lane-dense
    # rows, no padding, no extra HBM passes.
    lanes = None
    for cand in (1024, 512, 256, 128):
        if n % cand == 0:
            lanes = cand
            break

    x_flat = jnp.reshape(x, (-1,))
    padded = False
    if lanes is None:
        # Fallback only for sizes not divisible by 128: minimal pad (<128 elems)
        # so the flat array reshapes to (rows, 128). Ragged row-blocks are still
        # handled by Pallas itself (masked stores), not by padding to a block
        # multiple.
        lanes = 128
        n_pad = pl.cdiv(n, lanes) * lanes
        x_flat = jnp.pad(x_flat, (0, n_pad - n))
        padded = True
    rows = x_flat.size // lanes
    x2d = jnp.reshape(x_flat, (rows, lanes))

    # Block rows: ~target_block_bytes per block (aligned to the sublane
    # multiple), capped at 2 MiB so the double-buffered in+out footprint stays
    # <= ~8 MiB (v7x's smaller VMEM and v5e's scoped default are both safe).
    # If the whole slab is smaller, take it as one full block.
    max_block_rows = max(
        row_align,
        (target_block_bytes // (lanes * itemsize)) // row_align * row_align,
    )
    if rows <= max_block_rows:
        block_rows = rows            # full-dim block: always a legal shape
    else:
        block_rows = max_block_rows  # multiple of row_align; last block ragged

    grid = (pl.cdiv(rows, block_rows),)

    out2d = pl.pallas_call(
        _lambda_kernel,
        out_shape=jax.ShapeDtypeStruct((rows, lanes), orig_dtype),
        grid=grid,
        in_specs=[pl.BlockSpec((block_rows, lanes), lambda i: (i, 0))],
        out_specs=pl.BlockSpec((block_rows, lanes), lambda i: (i, 0)),
        # Elementwise, same shape/dtype: let the output reuse the input buffer.
        input_output_aliases={0: 0},
        compiler_params=pltpu.CompilerParams(
            dimension_semantics=("parallel",),        # dual-TC split on v7x
            vmem_limit_bytes=32 * 1024 * 1024,        # covers v5e's 16 MiB default
        ),
    )(x2d)

    out_flat = jnp.reshape(out2d, (-1,))
    if padded:
        out_flat = out_flat[:n]
    return jnp.reshape(out_flat, orig_shape)


if __name__ == "__main__":
    key = jax.random.PRNGKey(0)
    # NCHW input, consistent with PyTorch conv-style tensors.
    x = jax.random.normal(key, (2, 4, 16, 16), dtype=jnp.float32)

    # Reference: Lambda(func)(x) == func(x)  (computed before the kernel since
    # the kernel aliases its flattened input buffer).
    ref = _lambda_func(x)

    fwd = jax.jit(lambda_forward)
    out = fwd(x)
    out = jax.block_until_ready(out)

    assert out.shape == x.shape
    assert out.dtype == x.dtype
    assert jnp.allclose(out, ref, atol=1e-6, rtol=1e-6)

    print("KERNEL_OK")
</pallas_src>

<mosaic_0001>
module attributes {stable_mosaic.version = 11 : i64} {
  func.func @_lambda_kernel(%arg0: i32, %arg1: memref<2x1024xf32, #tpu.memory_space<vmem>>, %arg2: memref<2x1024xf32, #tpu.memory_space<vmem>>) attributes {dimension_semantics = [#tpu.dimension_semantics<parallel>], iteration_bounds = array<i64: 1>, scalar_prefetch = 0 : i64, scratch_operands = 0 : i64, tpu.core_type = #tpu.core_type<tc>, window_params = [{transform_indices = @transform_0, window_bounds = array<i64: 2, 1024>}, {transform_indices = @transform_1, window_bounds = array<i64: 2, 1024>}]} {
    %c0 = arith.constant 0 : index
    %c0_0 = arith.constant 0 : index
    %0 = vector.load %arg1[%c0, %c0_0] : memref<2x1024xf32, #tpu.memory_space<vmem>>, vector<2x1024xf32>
    %1 = arith.negf %0 : vector<2x1024xf32>
    %2 = math.exp %1 : vector<2x1024xf32>
    %cst = arith.constant 1.000000e+00 : f32
    %3 = vector.broadcast %cst : f32 to vector<2x1024xf32>
    %4 = arith.addf %3, %2 : vector<2x1024xf32>
    %5 = arith.divf %3, %4 : vector<2x1024xf32>
    %6 = arith.mulf %0, %5 : vector<2x1024xf32>
    %c0_1 = arith.constant 0 : index
    %c0_2 = arith.constant 0 : index
    %7 = vector.load %arg2[%c0_1, %c0_2] : memref<2x1024xf32, #tpu.memory_space<vmem>>, vector<2x1024xf32>
    tpu.vector_store %arg2[%c0_1, %c0_2], %6 {strides = array<i32>} : memref<2x1024xf32, #tpu.memory_space<vmem>>, vector<2x1024xf32>,
    return
  }
  func.func @transform_0(%arg0: i32) -> (i32, i32) {
    %c0_i32 = arith.constant 0 : i32
    %c0_i32_0 = arith.constant 0 : i32
    return %arg0, %c0_i32 : i32, i32
  }
  func.func @transform_1(%arg0: i32) -> (i32, i32) {
    %c0_i32 = arith.constant 0 : i32
    %c0_i32_0 = arith.constant 0 : i32
    return %arg0, %c0_i32 : i32, i32
  }
}

</mosaic_0001>

<bundles_post_ra>
// kernel: lambda_forward.1
= control target key start
LH: loop header
LB: loop body
LE: loop exit
PB: predicated region body
PF: predicated region fallthrough
CT: control target
= control target key end

     0   :  { %s62_s0 = inlined_call_operand.vmem [shape: f32[2,1024], index: 0, kind: input, shape index: {}, may-alias: {0,1}]   ;;  %s63_s1 = inlined_call_operand.vmem [shape: f32[2,1024], index: 1, kind: output, shape index: {}, may-alias: {0,1}]  }
   0x1   :  { %v8_v0 = vld [vmem:[%s62_s0] sm:$0xff]  ;;  %v9_v1 = vld [vmem:[%s62_s0 + $0x8] sm:$0xff] }
   0x2   :  { %v30_v2 = vmul.f32 -1.442695, %v8_v0  ;;  %v31_v3 = vmul.f32 -1.442695, %v9_v1 }
   0x4   :  { %32 = vpow2.f32 %v30_v2 }
   0x5   :  { %34 = vpow2.f32 %v31_v3 }
   0xe   :  { %v33_v4 = vpop.eup %32 }
   0xf   :  { %v35_v5 = vpop.eup %34  ;;  %v16_v6 = vadd.f32 1.0, %v33_v4 }
  0x10   :  { %v17_v7 = vadd.f32 1.0, %v35_v5 }
  0x11   :  { %36 = vrcp.f32 %v16_v6 }
  0x12   :  { %38 = vrcp.f32 %v17_v7 }
  0x1b   :  { %v37_v8 = vpop.eup %36 }
  0x1c   :  { %v39_v9 = vpop.eup %38  ;;  %v22_v10 = vmul.f32 %v37_v8, %v8_v0 }
  0x1d   :  { %v23_v11 = vmul.f32 %v39_v9, %v9_v1 }
  0x1e   :  { %24 = vst [vmem:[%s63_s1] sm:$0xff] %v22_v10 }
  0x1f   :  { %25 = vst [vmem:[%s63_s1 + $0x8] sm:$0xff] %v23_v11 }

</bundles_post_ra>
